<compile_context>
chip_gen: v5e
topology: v5e:2x2
jax: 0.10.0
libtpu: 0.0.40
codegen_flags: <defaults>
</compile_context>

<pallas_src>
import functools
import itertools

import numpy as np
import jax
import jax.numpy as jnp
from jax.experimental import pallas as pl
from jax.experimental.pallas import tpu as pltpu


_N_HEADS = 4
_LANE = 128
_SUBLANE = 8
_TILE_N_CAP = 1024                 # 512-1024 row tiles reach ~85% of HBM roofline
_VMEM_BUDGET = 48 * 1024 * 1024    # keep under v7x's 64 MiB physical VMEM


def _round_up(x, m):
    return ((x + m - 1) // m) * m


# ---------------------------------------------------------------------------
# Pallas kernel: one (batch, row-tile) grid step -> [tile_n, t_pad] cost block
# ---------------------------------------------------------------------------
def _cost_kernel(cost_class_w, cost_span_w, seq_l,
                 logits_ref, bounds_ref, onehot_ref, gt_ref, c_ref):
    # logits_ref : [tile_n, C]      class logits (C = true num_classes, un-padded)
    # bounds_ref : [4, tile_n, L]   head-major boundary logits
    # onehot_ref : [C, t_pad]       per-batch one-hot(labels); zero for padded cols
    # gt_ref     : [4, t_pad]       per-batch gt boundary indices
    # c_ref      : [tile_n, t_pad]  output cost block (lane-dense, 128-multiple)

    # ---- softmax numerator (normalisation folded into one post-matmul mul) --
    logits = logits_ref[...]
    m = jnp.max(logits, axis=-1, keepdims=True)
    e = jnp.exp(logits - m)
    s = jnp.sum(e, axis=-1, keepdims=True)                      # [tile_n, 1]

    # ---- cost_class = -prob[:, gt_ids]  via one-hot MXU matmul --------------
    gathered = jnp.dot(e, onehot_ref[...],
                       preferred_element_type=jnp.float32)      # [tile_n, t_pad]
    cost_class = -(gathered * pl.reciprocal(s, approx=False))   # exact recip

    # ---- per-head argmax on lane-dense tiles + pairwise L1 ('f1' mode) ------
    gt = gt_ref[...]                                            # [4, t_pad]
    cost_dis = None
    for h in range(_N_HEADS):
        xh = bounds_ref[h]                                      # [tile_n, L]
        mx = jnp.max(xh, axis=-1, keepdims=True)
        iota = jax.lax.broadcasted_iota(jnp.int32, xh.shape, 1)
        idx = jnp.min(jnp.where(xh == mx, iota, seq_l),
                      axis=-1, keepdims=True)                   # first-max index
        d = jnp.abs(idx.astype(jnp.float32) - gt[h:h + 1, :])   # [tile_n, t_pad]
        cost_dis = d if cost_dis is None else cost_dis + d

    c_ref[...] = cost_span_w * cost_dis + cost_class_w * cost_class


# ---------------------------------------------------------------------------
# Tile / VMEM sizing
# ---------------------------------------------------------------------------
def _pick_tile_and_vmem(num_queries, n_classes, seq_l, t_pad):
    """Largest row tile (multiple of 8, capped) whose double-buffered working
    set stays inside the VMEM budget, plus a matching vmem_limit_bytes."""
    per_row = 2 * 4 * (n_classes + _N_HEADS * seq_l + t_pad)      # logits+bounds+out
    fixed = 2 * 4 * (n_classes * t_pad + _N_HEADS * t_pad)        # onehot+gt
    cap = (_VMEM_BUDGET - fixed) // max(per_row, 1)
    cap = max(_SUBLANE, min(_TILE_N_CAP, (cap // _SUBLANE) * _SUBLANE))
    tile_n = min(cap, _round_up(num_queries, _SUBLANE))
    need = fixed + per_row * tile_n
    vmem_limit = int(min(64 * 1024 * 1024,
                         max(32 * 1024 * 1024, int(need * 1.25) + (1 << 20))))
    # TODO(synk): for very large GT counts (t_pad >= ~2048) add a second grid
    # axis over T so the resident onehot/output blocks fit v7x's 64 MiB VMEM.
    return int(tile_n), vmem_limit


# ---------------------------------------------------------------------------
# Jitted device path: packing + pallas_call fused into one XLA program
# ---------------------------------------------------------------------------
@functools.partial(jax.jit, static_argnames=(
    "q_pad", "tile_n", "t_pad", "cost_class", "cost_span", "vmem_limit"))
def _cost_matrix_device(pred_logits, pred_left_a, pred_right_a,
                        pred_left_o, pred_right_o,
                        labels_pad, gt_bounds_pad, *,
                        q_pad, tile_n, t_pad, cost_class, cost_span, vmem_limit):
    bs, q, n_classes = pred_logits.shape
    seq_l = pred_left_a.shape[-1]

    logits = pred_logits.astype(jnp.float32)                     # [bs, q, C]
    bounds = jnp.stack([pred_left_a, pred_right_a,
                        pred_left_o, pred_right_o],
                       axis=1).astype(jnp.float32)               # [bs, 4, q, L]
    if q_pad > q:
        logits = jnp.pad(logits, ((0, 0), (0, q_pad - q), (0, 0)))
        bounds = jnp.pad(bounds, ((0, 0), (0, 0), (0, q_pad - q), (0, 0)))

    # per-batch one-hot gather matrix [bs, C, t_pad]; padded cols carry label -1
    # so every class mismatches -> all-zero column -> gathered prob 0.
    class_iota = jnp.arange(n_classes, dtype=jnp.int32)[None, :, None]
    onehot = (labels_pad[:, None, :] == class_iota).astype(jnp.float32)
    gt_bounds = gt_bounds_pad.astype(jnp.float32)                # [bs, 4, t_pad]

    kernel = functools.partial(_cost_kernel, float(cost_class),
                               float(cost_span), int(seq_l))
    grid = (bs, q_pad // tile_n)   # batch outermost: onehot/gt re-fetched bs times only
    return pl.pallas_call(
        kernel,
        out_shape=jax.ShapeDtypeStruct((bs, q_pad, t_pad), jnp.float32),
        grid=grid,
        in_specs=[
            pl.BlockSpec((None, tile_n, n_classes), lambda b, i: (b, i, 0)),
            pl.BlockSpec((None, _N_HEADS, tile_n, seq_l), lambda b, i: (b, 0, i, 0)),
            pl.BlockSpec((None, n_classes, t_pad), lambda b, i: (b, 0, 0)),
            pl.BlockSpec((None, _N_HEADS, t_pad), lambda b, i: (b, 0, 0)),
        ],
        out_specs=pl.BlockSpec((None, tile_n, t_pad), lambda b, i: (b, i, 0)),
        compiler_params=pltpu.CompilerParams(
            dimension_semantics=("parallel", "parallel"),
            vmem_limit_bytes=vmem_limit,
        ),
    )(logits, bounds, onehot, gt_bounds)


# ---------------------------------------------------------------------------
# Host-side packing + driver
# ---------------------------------------------------------------------------
def _pack_targets(targets, t_pad):
    """Tiny host-side scatter of GT data into per-batch padded slots."""
    sizes = [int(s) for s in targets['sizes']]
    bs = len(sizes)
    labels = np.asarray(targets['labels']).reshape(-1)
    gts = [np.asarray(targets[k]).reshape(-1) for k in
           ('gt_left_a', 'gt_right_a', 'gt_left_o', 'gt_right_o')]
    labels_pad = np.full((bs, t_pad), -1, dtype=np.int32)
    gt_pad = np.zeros((bs, _N_HEADS, t_pad), dtype=np.float32)
    off = 0
    for b, s in enumerate(sizes):
        labels_pad[b, :s] = labels[off:off + s]
        for h in range(_N_HEADS):
            gt_pad[b, h, :s] = gts[h][off:off + s]
        off += s
    return labels_pad, gt_pad, sizes


def compute_cost_blocks(outputs, targets, cost_class=1.0, cost_span=1.0):
    """Per-batch cost blocks [bs, q_pad, t_pad] (the block-diagonal of the full
    cost matrix); only C[b, :num_queries, :sizes[b]] is meaningful."""
    bs, num_queries, n_classes = outputs['pred_logits'].shape
    sizes = [int(s) for s in targets['sizes']]
    t_max = max(sizes) if sizes else 0
    t_pad = _round_up(max(t_max, 1), _LANE)
    seq_l = int(np.asarray(outputs['pred_left_a']).shape[-1])

    tile_n, vmem_limit = _pick_tile_and_vmem(num_queries, n_classes, seq_l, t_pad)
    q_pad = _round_up(num_queries, tile_n)
    # keep >= 2 grid steps when possible so both v7x TensorCores get work
    if bs * (q_pad // tile_n) < 2 and q_pad > _SUBLANE:
        tile_n = max(_SUBLANE, (q_pad // 2 // _SUBLANE) * _SUBLANE)
        q_pad = _round_up(num_queries, tile_n)

    labels_pad, gt_pad, _ = _pack_targets(targets, t_pad)
    return _cost_matrix_device(
        jnp.asarray(outputs['pred_logits']),
        jnp.asarray(outputs['pred_left_a']),
        jnp.asarray(outputs['pred_right_a']),
        jnp.asarray(outputs['pred_left_o']),
        jnp.asarray(outputs['pred_right_o']),
        jnp.asarray(labels_pad), jnp.asarray(gt_pad),
        q_pad=int(q_pad), tile_n=int(tile_n), t_pad=int(t_pad),
        cost_class=float(cost_class), cost_span=float(cost_span),
        vmem_limit=int(vmem_limit))


# ---------------------------------------------------------------------------
# Host-side Hungarian assignment
# ---------------------------------------------------------------------------
def _linear_sum_assignment(cost):
    """Hungarian assignment on host (scipy if available, brute force otherwise)."""
    cost = np.asarray(cost, dtype=np.float64)
    try:
        from scipy.optimize import linear_sum_assignment
        r, c = linear_sum_assignment(cost)
        return np.asarray(r), np.asarray(c)
    except Exception:
        n_rows, n_cols = cost.shape
        best_rows, best_cost = None, None
        for rows in itertools.permutations(range(n_rows), n_cols):
            tot = sum(cost[r, j] for j, r in enumerate(rows))
            if best_cost is None or tot < best_cost:
                best_cost, best_rows = tot, rows
        rows = np.asarray(best_rows if best_rows is not None else (), dtype=np.int64)
        cols = np.arange(n_cols, dtype=np.int64)
        order = np.argsort(rows) if len(rows) else np.arange(0, dtype=np.int64)
        return rows[order], cols[order]


class HungarianMatcherRelPallas:
    """JAX/Pallas port of HungarianMatcher_rel (match_boundary_type='f1',
    solver='hungarian').  The cost blocks are produced by the Pallas kernel."""

    def __init__(self, cost_class=1.0, cost_span=1.0,
                 match_boundary_type='f1', solver='hungarian'):
        self.cost_class = cost_class
        self.cost_span = cost_span
        self.match_boundary_type = match_boundary_type
        self.solver = solver
        # TODO(synk): 'logp' boundary cost and 'auction' solver not ported.

    def __call__(self, outputs, targets):
        if self.solver == 'order':
            sizes = [int(s) for s in targets['sizes']]
            indices = [(list(range(s)), list(range(s))) for s in sizes]
        else:
            if self.match_boundary_type != 'f1':
                raise NotImplementedError("only match_boundary_type='f1' is ported")
            bs, num_queries, _ = outputs['pred_logits'].shape
            sizes = [int(s) for s in targets['sizes']]
            if sum(sizes) == 0:
                indices = [(np.zeros((0,), np.int64), np.zeros((0,), np.int64))
                           for _ in sizes]
            else:
                C = compute_cost_blocks(outputs, targets,
                                        self.cost_class, self.cost_span)
                C = np.asarray(jax.block_until_ready(C))   # [bs, q_pad, t_pad]
                indices = [_linear_sum_assignment(C[b, :num_queries, :s])
                           for b, s in enumerate(sizes)]

        return [(np.asarray(i, dtype=np.int64), np.asarray(j, dtype=np.int64))
                for i, j in indices]


# ---------------------------------------------------------------------------
# Plain numpy reference (sanity check)
# ---------------------------------------------------------------------------
def _reference_cost(outputs, targets, cost_class=1.0, cost_span=1.0):
    bs, Q, Cn = np.asarray(outputs['pred_logits']).shape
    logits = np.asarray(outputs['pred_logits'], np.float64).reshape(bs * Q, Cn)
    prob = np.exp(logits - logits.max(-1, keepdims=True))
    prob /= prob.sum(-1, keepdims=True)
    gt_ids = np.asarray(targets['labels'])
    cc = -prob[:, gt_ids]
    dis = np.zeros_like(cc)
    for name, gname in [('pred_left_a', 'gt_left_a'), ('pred_right_a', 'gt_right_a'),
                        ('pred_left_o', 'gt_left_o'), ('pred_right_o', 'gt_right_o')]:
        idx = np.asarray(outputs[name]).reshape(bs * Q, -1).argmax(-1)
        dis += np.abs(idx[:, None] - np.asarray(targets[gname])[None, :])
    return cost_span * dis + cost_class * cc


if __name__ == "__main__":
    key = jax.random.PRNGKey(0)
    bs, num_queries, num_classes, L = 2, 8, 32, 16
    sizes = [3, 2]
    T = sum(sizes)

    ks = jax.random.split(key, 10)
    outputs = {
        'pred_logits':  jax.random.normal(ks[0], (bs, num_queries, num_classes), jnp.float32),
        'pred_left_a':  jax.random.normal(ks[1], (bs, num_queries, L), jnp.float32),
        'pred_right_a': jax.random.normal(ks[2], (bs, num_queries, L), jnp.float32),
        'pred_left_o':  jax.random.normal(ks[3], (bs, num_queries, L), jnp.float32),
        'pred_right_o': jax.random.normal(ks[4], (bs, num_queries, L), jnp.float32),
    }
    targets = {
        'labels':     jax.random.randint(ks[5], (T,), 0, num_classes, jnp.int32),
        'gt_left_a':  jax.random.randint(ks[6], (T,), 0, L, jnp.int32),
        'gt_right_a': jax.random.randint(ks[7], (T,), 0, L, jnp.int32),
        'gt_left_o':  jax.random.randint(ks[8], (T,), 0, L, jnp.int32),
        'gt_right_o': jax.random.randint(ks[9], (T,), 0, L, jnp.int32),
        'sizes':      sizes,
    }

    matcher = HungarianMatcherRelPallas(cost_class=1.0, cost_span=1.0,
                                        match_boundary_type='f1',
                                        solver='hungarian')
    indices = matcher(outputs, targets)

    # sanity check: kernel-computed block-diagonal vs numpy full-matrix reference
    C_blocks = np.asarray(jax.block_until_ready(
        compute_cost_blocks(outputs, targets, 1.0, 1.0)))       # [bs, q_pad, t_pad]
    C_ref = _reference_cost(outputs, targets, 1.0, 1.0).reshape(bs, num_queries, T)
    off = 0
    for b, s in enumerate(sizes):
        np.testing.assert_allclose(C_blocks[b, :num_queries, :s],
                                   C_ref[b, :, off:off + s], rtol=1e-4, atol=1e-4)
        off += s

    for (i, j), s in zip(indices, sizes):
        assert len(i) == len(j) == min(num_queries, s)
        assert i.dtype == np.int64 and j.dtype == np.int64

    print("KERNEL_OK")
</pallas_src>

<mosaic_0001>
module attributes {stable_mosaic.version = 11 : i64} {
  func.func @_cost_kernel(%arg0: i32, %arg1: i32, %arg2: memref<1x8x32xf32, #tpu.memory_space<vmem>>, %arg3: memref<1x4x8x16xf32, #tpu.memory_space<vmem>>, %arg4: memref<1x32x128xf32, #tpu.memory_space<vmem>>, %arg5: memref<1x4x128xf32, #tpu.memory_space<vmem>>, %arg6: memref<1x8x128xf32, #tpu.memory_space<vmem>>) attributes {dimension_semantics = [#tpu.dimension_semantics<parallel>, #tpu.dimension_semantics<parallel>], iteration_bounds = array<i64: 2, 1>, scalar_prefetch = 0 : i64, scratch_operands = 0 : i64, tpu.core_type = #tpu.core_type<tc>, window_params = [{transform_indices = @transform_0, window_bounds = array<i64: 1, 8, 32>}, {transform_indices = @transform_1, window_bounds = array<i64: 1, 4, 8, 16>}, {transform_indices = @transform_2, window_bounds = array<i64: 1, 32, 128>}, {transform_indices = @transform_3, window_bounds = array<i64: 1, 4, 128>}, {transform_indices = @transform_4, window_bounds = array<i64: 1, 8, 128>}]} {
    %c0 = arith.constant 0 : index
    %c0_0 = arith.constant 0 : index
    %c0_1 = arith.constant 0 : index
    %0 = vector.load %arg2[%c0, %c0_0, %c0_1] : memref<1x8x32xf32, #tpu.memory_space<vmem>>, vector<1x8x32xf32>
    %1 = vector.shape_cast %0 : vector<1x8x32xf32> to vector<8x32xf32>
    %cst = arith.constant dense<0xFF800000> : vector<8xf32>
    %2 = vector.multi_reduction <maximumf>, %1, %cst [1] : vector<8x32xf32> to vector<8xf32>
    %3 = vector.shape_cast %2 : vector<8xf32> to vector<8x1xf32>
    %4 = vector.broadcast %3 : vector<8x1xf32> to vector<8x32xf32>
    %5 = arith.subf %1, %4 : vector<8x32xf32>
    %6 = math.exp %5 : vector<8x32xf32>
    %cst_2 = arith.constant dense<0.000000e+00> : vector<8xf32>
    %7 = vector.multi_reduction <add>, %6, %cst_2 [1] : vector<8x32xf32> to vector<8xf32>
    %8 = vector.shape_cast %7 : vector<8xf32> to vector<8x1xf32>
    %c0_3 = arith.constant 0 : index
    %c0_4 = arith.constant 0 : index
    %c0_5 = arith.constant 0 : index
    %9 = vector.load %arg4[%c0_3, %c0_4, %c0_5] : memref<1x32x128xf32, #tpu.memory_space<vmem>>, vector<1x32x128xf32>
    %10 = vector.shape_cast %9 : vector<1x32x128xf32> to vector<32x128xf32>
    %cst_6 = arith.constant dense<0.000000e+00> : vector<8x128xf32>
    %11 = tpu.matmul %6, %10, %cst_6 {dimension_numbers = #tpu.dot_dimension_numbers<[1], [0], [0], [1], [0, 0, 1, 1], [], []>} : vector<8x32xf32>, vector<32x128xf32>, vector<8x128xf32> -> vector<8x128xf32>
    %12 = tpu.reciprocal %8 : vector<8x1xf32> -> vector<8x1xf32>
    %13 = vector.broadcast %12 : vector<8x1xf32> to vector<8x128xf32>
    %14 = arith.mulf %11, %13 : vector<8x128xf32>
    %cst_7 = arith.constant 0.000000e+00 : f32
    %15 = vector.broadcast %cst_7 : f32 to vector<8x128xf32>
    %16 = arith.subf %15, %14 : vector<8x128xf32>
    %c0_8 = arith.constant 0 : index
    %c0_9 = arith.constant 0 : index
    %c0_10 = arith.constant 0 : index
    %17 = vector.load %arg5[%c0_8, %c0_9, %c0_10] : memref<1x4x128xf32, #tpu.memory_space<vmem>>, vector<1x4x128xf32>
    %18 = vector.shape_cast %17 : vector<1x4x128xf32> to vector<4x128xf32>
    %c0_11 = arith.constant 0 : index
    %c0_12 = arith.constant 0 : index
    %c0_13 = arith.constant 0 : index
    %c0_14 = arith.constant 0 : index
    %19 = vector.load %arg3[%c0_11, %c0_12, %c0_13, %c0_14] : memref<1x4x8x16xf32, #tpu.memory_space<vmem>>, vector<1x1x8x16xf32>
    %20 = vector.shape_cast %19 : vector<1x1x8x16xf32> to vector<8x16xf32>
    %cst_15 = arith.constant dense<0xFF800000> : vector<8xf32>
    %21 = vector.multi_reduction <maximumf>, %20, %cst_15 [1] : vector<8x16xf32> to vector<8xf32>
    %22 = vector.shape_cast %21 : vector<8xf32> to vector<8x1xf32>
    %23 = tpu.iota {dimensions = array<i32: 1>} : vector<8x16xi32>
    %24 = vector.broadcast %22 : vector<8x1xf32> to vector<8x16xf32>
    %25 = arith.cmpf oeq, %20, %24 : vector<8x16xf32>
    %c16_i32 = arith.constant 16 : i32
    %26 = vector.broadcast %c16_i32 : i32 to vector<8x16xi32>
    %27 = arith.select %25, %23, %26 : vector<8x16xi1>, vector<8x16xi32>
    %cst_16 = arith.constant dense<2147483647> : vector<8xi32>
    %28 = vector.multi_reduction <minsi>, %27, %cst_16 [1] : vector<8x16xi32> to vector<8xi32>
    %29 = vector.shape_cast %28 : vector<8xi32> to vector<8x1xi32>
    %30 = arith.sitofp %29 : vector<8x1xi32> to vector<8x1xf32>
    %31 = vector.extract_strided_slice %18 {offsets = [0, 0], sizes = [1, 128], strides = [1, 1]} : vector<4x128xf32> to vector<1x128xf32>
    %32 = vector.broadcast %30 : vector<8x1xf32> to vector<8x128xf32>
    %33 = vector.broadcast %31 : vector<1x128xf32> to vector<8x128xf32>
    %34 = arith.subf %32, %33 : vector<8x128xf32>
    %35 = math.absf %34 : vector<8x128xf32>
    %c0_17 = arith.constant 0 : index
    %c1 = arith.constant 1 : index
    %c0_18 = arith.constant 0 : index
    %c0_19 = arith.constant 0 : index
    %36 = vector.load %arg3[%c0_17, %c1, %c0_18, %c0_19] : memref<1x4x8x16xf32, #tpu.memory_space<vmem>>, vector<1x1x8x16xf32>
    %37 = vector.shape_cast %36 : vector<1x1x8x16xf32> to vector<8x16xf32>
    %cst_20 = arith.constant dense<0xFF800000> : vector<8xf32>
    %38 = vector.multi_reduction <maximumf>, %37, %cst_20 [1] : vector<8x16xf32> to vector<8xf32>
    %39 = vector.shape_cast %38 : vector<8xf32> to vector<8x1xf32>
    %40 = tpu.iota {dimensions = array<i32: 1>} : vector<8x16xi32>
    %41 = vector.broadcast %39 : vector<8x1xf32> to vector<8x16xf32>
    %42 = arith.cmpf oeq, %37, %41 : vector<8x16xf32>
    %c16_i32_21 = arith.constant 16 : i32
    %43 = vector.broadcast %c16_i32_21 : i32 to vector<8x16xi32>
    %44 = arith.select %42, %40, %43 : vector<8x16xi1>, vector<8x16xi32>
    %cst_22 = arith.constant dense<2147483647> : vector<8xi32>
    %45 = vector.multi_reduction <minsi>, %44, %cst_22 [1] : vector<8x16xi32> to vector<8xi32>
    %46 = vector.shape_cast %45 : vector<8xi32> to vector<8x1xi32>
    %47 = arith.sitofp %46 : vector<8x1xi32> to vector<8x1xf32>
    %48 = vector.extract_strided_slice %18 {offsets = [1, 0], sizes = [1, 128], strides = [1, 1]} : vector<4x128xf32> to vector<1x128xf32>
    %49 = vector.broadcast %47 : vector<8x1xf32> to vector<8x128xf32>
    %50 = vector.broadcast %48 : vector<1x128xf32> to vector<8x128xf32>
    %51 = arith.subf %49, %50 : vector<8x128xf32>
    %52 = math.absf %51 : vector<8x128xf32>
    %53 = arith.addf %35, %52 : vector<8x128xf32>
    %c0_23 = arith.constant 0 : index
    %c2 = arith.constant 2 : index
    %c0_24 = arith.constant 0 : index
    %c0_25 = arith.constant 0 : index
    %54 = vector.load %arg3[%c0_23, %c2, %c0_24, %c0_25] : memref<1x4x8x16xf32, #tpu.memory_space<vmem>>, vector<1x1x8x16xf32>
    %55 = vector.shape_cast %54 : vector<1x1x8x16xf32> to vector<8x16xf32>
    %cst_26 = arith.constant dense<0xFF800000> : vector<8xf32>
    %56 = vector.multi_reduction <maximumf>, %55, %cst_26 [1] : vector<8x16xf32> to vector<8xf32>
    %57 = vector.shape_cast %56 : vector<8xf32> to vector<8x1xf32>
    %58 = tpu.iota {dimensions = array<i32: 1>} : vector<8x16xi32>
    %59 = vector.broadcast %57 : vector<8x1xf32> to vector<8x16xf32>
    %60 = arith.cmpf oeq, %55, %59 : vector<8x16xf32>
    %c16_i32_27 = arith.constant 16 : i32
    %61 = vector.broadcast %c16_i32_27 : i32 to vector<8x16xi32>
    %62 = arith.select %60, %58, %61 : vector<8x16xi1>, vector<8x16xi32>
    %cst_28 = arith.constant dense<2147483647> : vector<8xi32>
    %63 = vector.multi_reduction <minsi>, %62, %cst_28 [1] : vector<8x16xi32> to vector<8xi32>
    %64 = vector.shape_cast %63 : vector<8xi32> to vector<8x1xi32>
    %65 = arith.sitofp %64 : vector<8x1xi32> to vector<8x1xf32>
    %66 = vector.extract_strided_slice %18 {offsets = [2, 0], sizes = [1, 128], strides = [1, 1]} : vector<4x128xf32> to vector<1x128xf32>
    %67 = vector.broadcast %65 : vector<8x1xf32> to vector<8x128xf32>
    %68 = vector.broadcast %66 : vector<1x128xf32> to vector<8x128xf32>
    %69 = arith.subf %67, %68 : vector<8x128xf32>
    %70 = math.absf %69 : vector<8x128xf32>
    %71 = arith.addf %53, %70 : vector<8x128xf32>
    %c0_29 = arith.constant 0 : index
    %c3 = arith.constant 3 : index
    %c0_30 = arith.constant 0 : index
    %c0_31 = arith.constant 0 : index
    %72 = vector.load %arg3[%c0_29, %c3, %c0_30, %c0_31] : memref<1x4x8x16xf32, #tpu.memory_space<vmem>>, vector<1x1x8x16xf32>
    %73 = vector.shape_cast %72 : vector<1x1x8x16xf32> to vector<8x16xf32>
    %cst_32 = arith.constant dense<0xFF800000> : vector<8xf32>
    %74 = vector.multi_reduction <maximumf>, %73, %cst_32 [1] : vector<8x16xf32> to vector<8xf32>
    %75 = vector.shape_cast %74 : vector<8xf32> to vector<8x1xf32>
    %76 = tpu.iota {dimensions = array<i32: 1>} : vector<8x16xi32>
    %77 = vector.broadcast %75 : vector<8x1xf32> to vector<8x16xf32>
    %78 = arith.cmpf oeq, %73, %77 : vector<8x16xf32>
    %c16_i32_33 = arith.constant 16 : i32
    %79 = vector.broadcast %c16_i32_33 : i32 to vector<8x16xi32>
    %80 = arith.select %78, %76, %79 : vector<8x16xi1>, vector<8x16xi32>
    %cst_34 = arith.constant dense<2147483647> : vector<8xi32>
    %81 = vector.multi_reduction <minsi>, %80, %cst_34 [1] : vector<8x16xi32> to vector<8xi32>
    %82 = vector.shape_cast %81 : vector<8xi32> to vector<8x1xi32>
    %83 = arith.sitofp %82 : vector<8x1xi32> to vector<8x1xf32>
    %84 = vector.extract_strided_slice %18 {offsets = [3, 0], sizes = [1, 128], strides = [1, 1]} : vector<4x128xf32> to vector<1x128xf32>
    %85 = vector.broadcast %83 : vector<8x1xf32> to vector<8x128xf32>
    %86 = vector.broadcast %84 : vector<1x128xf32> to vector<8x128xf32>
    %87 = arith.subf %85, %86 : vector<8x128xf32>
    %88 = math.absf %87 : vector<8x128xf32>
    %89 = arith.addf %71, %88 : vector<8x128xf32>
    %cst_35 = arith.constant 1.000000e+00 : f32
    %90 = vector.broadcast %cst_35 : f32 to vector<8x128xf32>
    %91 = arith.mulf %90, %89 : vector<8x128xf32>
    %cst_36 = arith.constant 1.000000e+00 : f32
    %92 = vector.broadcast %cst_36 : f32 to vector<8x128xf32>
    %93 = arith.mulf %92, %16 : vector<8x128xf32>
    %94 = arith.addf %91, %93 : vector<8x128xf32>
    %c0_37 = arith.constant 0 : index
    %c0_38 = arith.constant 0 : index
    %c0_39 = arith.constant 0 : index
    %95 = vector.load %arg6[%c0_37, %c0_38, %c0_39] : memref<1x8x128xf32, #tpu.memory_space<vmem>>, vector<1x8x128xf32>
    %96 = vector.shape_cast %95 : vector<1x8x128xf32> to vector<8x128xf32>
    %97 = vector.shape_cast %94 : vector<8x128xf32> to vector<1x8x128xf32>
    tpu.vector_store %arg6[%c0_37, %c0_38, %c0_39], %97 {strides = array<i32>} : memref<1x8x128xf32, #tpu.memory_space<vmem>>, vector<1x8x128xf32>,
    return
  }
  func.func @transform_0(%arg0: i32, %arg1: i32) -> (i32, i32, i32) {
    %c0_i32 = arith.constant 0 : i32
    %c0_i32_0 = arith.constant 0 : i32
    return %arg0, %arg1, %c0_i32 : i32, i32, i32
  }
  func.func @transform_1(%arg0: i32, %arg1: i32) -> (i32, i32, i32, i32) {
    %c0_i32 = arith.constant 0 : i32
    %c0_i32_0 = arith.constant 0 : i32
    %c0_i32_1 = arith.constant 0 : i32
    return %arg0, %c0_i32, %arg1, %c0_i32_0 : i32, i32, i32, i32
  }
  func.func @transform_2(%arg0: i32, %arg1: i32) -> (i32, i32, i32) {
    %c0_i32 = arith.constant 0 : i32
    %c0_i32_0 = arith.constant 0 : i32
    %c0_i32_1 = arith.constant 0 : i32
    return %arg0, %c0_i32, %c0_i32_0 : i32, i32, i32
  }
  func.func @transform_3(%arg0: i32, %arg1: i32) -> (i32, i32, i32) {
    %c0_i32 = arith.constant 0 : i32
    %c0_i32_0 = arith.constant 0 : i32
    %c0_i32_1 = arith.constant 0 : i32
    return %arg0, %c0_i32, %c0_i32_0 : i32, i32, i32
  }
  func.func @transform_4(%arg0: i32, %arg1: i32) -> (i32, i32, i32) {
    %c0_i32 = arith.constant 0 : i32
    %c0_i32_0 = arith.constant 0 : i32
    return %arg0, %arg1, %c0_i32 : i32, i32, i32
  }
}

</mosaic_0001>

<bundles_post_ra>
// kernel: _cost_matrix_device.1
= control target key start
LH: loop header
LB: loop body
LE: loop exit
PB: predicated region body
PF: predicated region fallthrough
CT: control target
= control target key end

     0   :  { %9 = vsyncpa [#allocation3], 0  ;;  %s890_s0 = inlined_call_operand.vmem [shape: f32[2,8,32], index: 0, kind: input, shape index: {}]   ;;  %s891_s1 = inlined_call_operand.vmem [shape: f32[2,4,8,16], index: 1, kind: input, shape index: {}]   ;;  %s892_s2 = inlined_call_operand.vmem [shape: f32[2,32,128], index: 2, kind: input, shape index: {}]   ;;  %s893_s3 = inlined_call_operand.vmem [shape: f32[2,4,128], index: 3, kind: input, shape index: {}]   ;;  %s894_s4 = inlined_call_operand.hbm [shape: f32[2,8,128], index: 4, kind: output, shape index: {}]  }
   0x1   :  { %11 = vsyncpa [#allocation3 + $0x1], 0  ;;  %s768_s15 = smov 0   ;;  %s770_s16 = smov 0  }
   0x2   :  { %s772_s17 = smov 0   ;;  %s774_s18 = smov 0  }
   0x3   :  { %s776_s19 = smov 0   ;;  %s778_s20 = smov 0  }
   0x4 LB: > { %s582_s21 = sadd.s32 4294967295, %s741_s20   ;;  %s583_s22 = sadd.s32 4294967294, %s741_s20   ;;  %s741_s20 = sphi %s778_s20, %s17_s20   ;;  %s737_s19 = sphi %s776_s19, %s901_s19   ;;  %s733_s18 = sphi %s774_s18, %s900_s18   ;;  %s729_s17 = sphi %s772_s17, %s899_s17   ;;  %s725_s16 = sphi %s770_s16, %s898_s16   ;;  %s721_s15 = sphi %s768_s15, %s897_s15  }
   0x5   : > { %s29_s23 = sadd.s32 1, %s737_s19  ;;  %s146_s24 = sadd.s32 1, %s729_s17 }
   0x6   : > { %p31_p0 = scmp.ge.s32.totalorder %s29_s23, 2  ;;  %p156_p1 = scmp.ne.s32.totalorder %s729_s17, %s725_s16 }
   0x7   : > { %p157_p2 = scmp.eq.s32.totalorder %s582_s21, 1  ;;  %p162_p3 = scmp.ne.s32.totalorder %s725_s16, %s721_s15 }
   0x8   : > { %s903_s23 = smov (%p31_p0, %s29_s23), 0  ;;  %p163_p5 = scmp.eq.s32.totalorder %s583_s22, 1 }
   0x9   : > { %p808_p4 = por %p157_p2, %p156_p1  ;;  %s141_s26 = ssub.s32 %s737_s19, %s903_s23 }
   0xa   : > { %p586_p6 = scmp.ge.s32.totalorder %s741_s20, 1  ;;  %p144_p7 = scmp.eq.s32.totalorder %s141_s26, 0 }
   0xb   : > { %p815_p8 = por %p163_p5, %p162_p3  ;;  %p217_p9 = scmp.lt.s32.totalorder %s741_s20, 3 }
   0xc   : > { %s821_s28 = scalar_select %p144_p7, %s729_s17, %s146_s24  }
   0xd   : > { %p218_p10 = pnand %p586_p6, %p217_p9 }
   0xe   : > { %p262_p11 = scmp.lt.s32.totalorder (!%p218_p10), %s733_s18, 1  ;;  %s683_s22 = scalar_lea.hbm (!%p218_p10), %s894_s4, 16 }
   0xf   : > { %221 = sbr.rel (%p218_p10) target bundleno = 417 (0x1a1), region = 36 }
  0x14   : > { %s825_s29 = scalar_select %p262_p11, %s733_s18, 1  ;;  %vm342_vm0 = vcmask 130048   ;;  %vm287_vm1 = vcmask 261120   ;;  %v346_v14 = vlaneseq }
  0x16   : > { %s602_s30 = sshll.u32 %s825_s29, 5  ;;  %s588_s5 = sshll.u32 %s825_s29, 3  ;;  %v347_v15 = vand.u32 127, %v346_v14 }
  0x17   : > { %s276_s8 = scalar_lea.vmem %s891_s1, %s602_s30  ;;  %s268_s11 = scalar_lea.vmem %s890_s0, %s588_s5 }
  0x18   : > { %v595_v0 = vld [vmem:[%s276_s8 + $0x8] sm:$0xff]  ;;  %v286_v1 = vld [vmem:[%s268_s11] sm:$0xff]  ;;  %v597_v4 = vld [vmem:[%s276_s8 + $0x18] sm:$0xff]  ;;  %s281_s14 = scalar_lea.vmem %s892_s2, %s602_s30  ;;  %s593_s21 = sshll.u32 %s825_s29, 2 }
  0x19   : > { %v371_v2 = vsel %vm342_vm0, %v595_v0, -inf  ;;  %v288_v3 = vsel %vm287_vm1, %v286_v1, -inf  ;;  %v425_v5 = vsel %vm342_vm0, %v597_v4, -inf  ;;  %v596_v6 = vld [vmem:[%s276_s8 + $0x10] sm:$0xff]  ;;  %v341_v7 = vld [vmem:[%s276_s8] sm:$0xff]  ;;  %v300_v10 = vld [vmem:[%s281_s14 + $0x18] sm:$0xff]  ;;  %s285_s26 = scalar_lea.vmem %s893_s3, %s593_s21 }
  0x1a   : > { %372 = vmax.xlane.f32.xlu1 %v371_v2  ;;  %289 = vmax.xlane.f32.xlu0 %v288_v3  ;;  %v398_v8 = vsel %vm342_vm0, %v596_v6, -inf  ;;  %v343_v9 = vsel %vm342_vm0, %v341_v7, -inf  ;;  %v299_v11 = vld [vmem:[%s281_s14 + $0x10] sm:$0xff]  ;;  %v298_v12 = vld [vmem:[%s281_s14 + $0x8] sm:$0xff]  ;;  %v297_v13 = vld [vmem:[%s281_s14] sm:$0xff]  ;;  %s259_s29 = sand.u32 1, %s725_s16  }
  0x1b   : > { %426 = vmax.xlane.f32.xlu2 %v425_v5  ;;  %316 = vmatpush.msra.mxu0 %v300_v10  ;;  %v340_v3 = vld [vmem:[%s285_s26] sm:$0xf]  ;;  %s587_s30 = sshll.u32 %s259_s29, 3  ;;  %s599_s5 = sshll.u32 %s733_s18, 3 }
  0x1c   : > { %v366_v14 = vperm.slane %v340_v3, 0  ;;  %s464_s8 = scalar_lea.hbm %s894_s4, %s599_s5  ;;  %s261_s9 = scalar_lea.vmem [#allocation2], %s587_s30 }
  0x1d   : > { %317 = vmatpush.msra.mxu0 %v299_v11  ;;  %s466_s10 = sshll.u32 %s261_s9, 4  ;;  %s468_s11 = sshll.u32 %s464_s8, 4  ;;  %s467_s10 = int_to_ptr.vmem [resolvable:$true] %s466_s10  ;;  %s469_s11 = int_to_ptr.hbm [resolvable:$true] %s468_s11 }
  0x1e   : > { %s453_s18 = scalar_lea.sflag [#allocation3], %s259_s29  ;;  %s677_s12 = sshra.s32 %s469_s11, 4  ;;  %s678_s12 = int_to_ptr.hbm [resolvable:$true] %s677_s12 }
  0x1f   : > { %318 = vmatpush.msra.mxu0 %v298_v12  ;;  %s679_s13 = scalar_lea.hbm %s678_s12, 8  ;;  %p684_p1 = scmp.lt.s32.totalorder %s678_s12, %s894_s4 }
  0x20   : > { %p680_p12 = scmp.ne.s32.totalorder %s678_s12, %s679_s13  ;;  %p685_p2 = scmp.lt.s32.totalorder %s683_s22, %s679_s13 }
  0x21   : > { %319 = vmatpush.msra.mxu0 %v297_v13 }
  0x22   : > { %399 = vmax.xlane.f32.xlu1 %v398_v8  ;;  %344 = vmax.xlane.f32.xlu0 %v343_v9  ;;  %p681_p13 = pnand %p680_p12, %p808_p4  ;;  %p686_p3 = por %p685_p2, %p684_p1 }
  0x24   : > { %p682_p0 = pneg %p681_p13 }
  0x26   : > { %p687_p5 = pnand %p686_p3, %p682_p0 }
  0x8d   : > { %v373_v16 = vpop.xlane.xlu1 %372  ;;  %v290_v17 = vpop.xlane.xlu0 %289 }
  0x8e   : > { %vm374_vm2 = vcmp.eq.f32.partialorder %v595_v0, %v373_v16  ;;  %v291_v18 = vsub.f32 %v286_v1, %v290_v17  ;;  %v427_v23 = vpop.xlane.xlu2 %426 }
  0x8f   : > { %v375_v19 = vsel %vm374_vm2, %v347_v15, 16  ;;  %vm428_vm3 = vcmp.eq.f32.partialorder %v597_v4, %v427_v23 }
  0x90   : > { %v376_v20 = vsel %vm342_vm0, %v375_v19, 2147483647  ;;  %v292_v21 = vmul.f32 1.442695, %v291_v18  ;;  %v429_v32 = vsel %vm428_vm3, %v347_v15, 16 }
  0x91   : > { %v378_v22 = vshra.s32 %v376_v20, 16  ;;  %v430_v35 = vsel %vm342_vm0, %v429_v32, 2147483647  ;;  %v377_v41 = vand.u32 65535, %v376_v20 }
  0x92   : > { %659 = vpow2.f32 %v292_v21  ;;  %v432_v39 = vshra.s32 %v430_v35, 16  ;;  %v431_v53 = vand.u32 65535, %v430_v35  ;;  %v446_v35 = vperm.slane %v340_v3, 3 }
  0x93   : > { %v380_v24 = vcvt.s32.f32 %v378_v22  ;;  %v379_v43 = vcvt.s32.f32 %v377_v41 }
  0x94   : > { %v434_v40 = vcvt.s32.f32 %v432_v39  ;;  %v433_v55 = vcvt.s32.f32 %v431_v53 }
  0x95   : > { %v400_v25 = vpop.xlane.xlu1 %399  ;;  %381 = vmin.xlane.f32.xlu0 %v380_v24  ;;  %v345_v26 = vpop.xlane.xlu0 %344 }
  0x96   : > { %vm401_vm4 = vcmp.eq.f32.partialorder %v596_v6, %v400_v25  ;;  %vm348_vm5 = vcmp.eq.f32.partialorder %v341_v7, %v345_v26  ;;  %v392_v7 = vperm.slane %v340_v3, 1 }
  0x97   : > { %v402_v27 = vsel %vm401_vm4, %v347_v15, 16  ;;  %v349_v28 = vsel %vm348_vm5, %v347_v15, 16 }
  0x98   : > { %v660_v29 = vpop.eup %659  ;;  %v403_v30 = vsel %vm342_vm0, %v402_v27, 2147483647  ;;  %v350_v31 = vsel %vm342_vm0, %v349_v28, 2147483647 }
  0x99   : > { %594 = vmatmul.msk.f32.vlgmr.msra.gmra.mxu0 %vm287_vm1, %v660_v29  ;;  %v405_v33 = vshra.s32 %v403_v30, 16  ;;  %v352_v34 = vshra.s32 %v350_v31, 16  ;;  %v294_v38 = vsel %vm287_vm1, %v660_v29, 0.0  ;;  %v404_v45 = vand.u32 65535, %v403_v30 }
  0x9a   : > { %v351_v46 = vand.u32 65535, %v350_v31 }
  0x9b   : > { %v407_v36 = vcvt.s32.f32 %v405_v33  ;;  %v354_v37 = vcvt.s32.f32 %v352_v34  ;;  %v406_v48 = vcvt.s32.f32 %v404_v45 }
  0x9c   : > { %v353_v50 = vcvt.s32.f32 %v351_v46 }
  0x9d   : > { %408 = vmin.xlane.f32.xlu1 %v407_v36  ;;  %295 = vadd.xlane.f32.xlu0 %v294_v38 }
  0x9e   : > { %355 = vmin.xlane.f32.xlu2 %v354_v37 }
  0xa6   : > { %435 = vmin.xlane.f32.xlu2 %v434_v40 }
 0x108   : > { %v382_v42 = vpop.xlane.xlu0 %381 }
 0x109   : > { %vm383_vm6 = vcmp.eq.f32.partialorder %v380_v24, %v382_v42  ;;  %v388_v59 = vcvt.f32.s32 %v382_v42  ;;  %v419_v24 = vperm.slane %v340_v3, 2 }
 0x10a   : > { %v384_v44 = vsel %vm383_vm6, %v379_v43, inf }
 0x10b   : > { %385 = vmin.xlane.f32.xlu2 %v384_v44  ;;  %v389_v63 = vshll.u32 %v388_v59, 16 }
 0x110   : > { %v409_v47 = vpop.xlane.xlu1 %408  ;;  %v296_v57 = vpop.xlane.xlu0 %295 }
 0x111   : > { %v356_v49 = vpop.xlane.xlu2 %355  ;;  %vm410_vm7 = vcmp.eq.f32.partialorder %v407_v36, %v409_v47  ;;  %661 = vrcp.f32 %v296_v57  ;;  %v415_v0 = vcvt.f32.s32 %v409_v47  ;;  %v333_v21 = vand.u32 2147483647, %v296_v57 }
 0x112   : > { %v411_v51 = vsel %vm410_vm7, %v406_v48, inf  ;;  %vm357_vm8 = vcmp.eq.f32.partialorder %v354_v37, %v356_v49  ;;  %v362_v1 = vcvt.f32.s32 %v356_v49  ;;  %v335_v22 = vand.u32 2147483648, %v296_v57 }
 0x113   : > { %412 = vmin.xlane.f32.xlu0 %v411_v51  ;;  %v358_v52 = vsel %vm357_vm8, %v353_v50, inf  ;;  %v416_v6 = vshll.u32 %v415_v0, 16  ;;  %vm329_vm11 = vweird.f32 %v296_v57  ;;  %vm334_vm13 = vcmp.eq.f32.partialorder %v333_v21, 8.507059e+37 }
 0x114   : > { %359 = vmin.xlane.f32.xlu1 %v358_v52  ;;  %v363_v10 = vshll.u32 %v362_v1, 16  ;;  %v336_v32 = vor.u32 1.1754944e-38, %v335_v22 }
 0x116   : > { %v321_v39 = vpop.f32.mrf.mxu0 }
 0x117   : > { %v662_v58 = vpop.eup %661 }
 0x118   : > { %v325_v61 = vmul.f32 %v662_v58, %v296_v57  ;;  %vm330_vm10 = vweird.f32 %v662_v58 }
 0x119   : > { %v436_v54 = vpop.xlane.xlu2 %435  ;;  %vm331_vm12 = vmor %vm329_vm11, %vm330_vm10 }
 0x11a   : > { %vm437_vm9 = vcmp.eq.f32.partialorder %v434_v40, %v436_v54  ;;  %v326_v2 = vsub.f32 1.0, %v325_v61  ;;  %v442_v17 = vcvt.f32.s32 %v436_v54 }
 0x11b   : > { %v438_v56 = vsel %vm437_vm9, %v433_v55, inf }
 0x11c   : > { %439 = vmin.xlane.f32.xlu1 %v438_v56  ;;  %v327_v11 = vmul.f32 %v662_v58, %v326_v2  ;;  %v443_v26 = vshll.u32 %v442_v17, 16 }
 0x11e   : > { %v328_v18 = vadd.f32 %v662_v58, %v327_v11 }
 0x120   : > { %v332_v28 = vsel %vm331_vm12, %v662_v58, %v328_v18 }
 0x121   : > { %v337_v37 = vsel %vm334_vm13, %v336_v32, %v332_v28 }
 0x122   : > { %v338_v40 = vmul.f32 %v337_v37, %v321_v39 }
 0x124   : > { %v339_v45 = vsub.f32 0.0, %v338_v40 }
 0x17e   : > { %v386_v60 = vpop.xlane.xlu2 %385 }
 0x17f   : > { %v387_v62 = vcvt.f32.s32 %v386_v60 }
 0x181   : > { %v390_v4 = vadd.s32 %v389_v63, %v387_v62 }
 0x183   : > { %v391_v12 = vcvt.s32.f32 %v390_v4 }
 0x185   : > { %v393_v19 = vsub.f32 %v391_v12, %v392_v7 }
 0x186   : > { %v413_v5 = vpop.xlane.xlu0 %412 }
 0x187   : > { %v360_v8 = vpop.xlane.xlu1 %359  ;;  %v414_v9 = vcvt.f32.s32 %v413_v5  ;;  %v394_v29 = vand.u32 2147483647, %v393_v19 }
 0x188   : > { %v361_v13 = vcvt.f32.s32 %v360_v8 }
 0x189   : > { %v417_v16 = vadd.s32 %v416_v6, %v414_v9 }
 0x18a   : > { %v364_v15 = vadd.s32 %v363_v10, %v361_v13 }
 0x18b   : > { %v418_v25 = vcvt.s32.f32 %v417_v16 }
 0x18c   : > { %v365_v20 = vcvt.s32.f32 %v364_v15 }
 0x18d   : > { %v420_v34 = vsub.f32 %v418_v25, %v419_v24 }
 0x18e   : > { %v367_v23 = vsub.f32 %v365_v20, %v366_v14 }
 0x18f   : > { %v440_v27 = vpop.xlane.xlu1 %439  ;;  %v421_v41 = vand.u32 2147483647, %v420_v34 }
 0x190   : > { %v368_v30 = vand.u32 2147483647, %v367_v23  ;;  %v441_v31 = vcvt.f32.s32 %v440_v27 }
 0x192   : > { %v395_v33 = vadd.f32 %v394_v29, %v368_v30  ;;  %v444_v36 = vadd.s32 %v443_v26, %v441_v31 }
 0x194   : > { %v445_v38 = vcvt.s32.f32 %v444_v36  ;;  %v422_v43 = vadd.f32 %v421_v41, %v395_v33 }
 0x196   : > { %v447_v42 = vsub.f32 %v445_v38, %v446_v35 }
 0x198   : > { %v448_v44 = vand.u32 2147483647, %v447_v42 }
 0x19a   : > { %v449_v46 = vadd.f32 %v448_v44, %v422_v43 }
 0x19c   : > { %v450_v47 = vadd.f32 %v449_v46, %v339_v45 }
 0x19e   : > { %451 = vst [vmem:[%s261_s9] sm:$0xff] %v450_v47 }
 0x19f   : > { %690 = shalt.err (!%p687_p5)
}
 0x1a0   : > { %604 = dma.vmem_to_hbm [thread:$0]  (%p808_p4), %s467_s10, 128, %s469_s11, %s453_s18  }
 0x1a1 PF: > { %p610_p6 = scmp.ge.s32.totalorder %s741_s20, 2  ;;  %s480_s29 = sand.u32 1, %s721_s15  }
 0x1a2   : > { %s481_s30 = scalar_lea.sflag [#allocation3], %s480_s29 }
 0x1a3   : > { %p607_p7 = pnand %p610_p6, %p815_p8 }
 0x1a5   : > { %p608_p9 = pneg %p607_p7 }
 0x1a7   : > { %716 = dma.done.wait (%p608_p9), %s481_s30, 128  }
 0x1a8   : > { %718 = vsyncadd (%p608_p9), %s481_s30, 4294967168  ;;  %s17_s20 = sadd.s32 1, %s741_s20   ;;  %s897_s15 = smov %s725_s16 }
 0x1a9   : > { %p14_p10 = scmp.ge.s32.totalorder %s17_s20, 4   ;;  %s898_s16 = smov %s729_s17 }
 0x1aa   : > { %s899_s17 = smov %s821_s28  ;;  %s900_s18 = smov %s737_s19 }
 0x1ab   : > { %s901_s19 = smov %s903_s23  ;;  %16 = sbr.rel (!%p14_p10) target bundleno = 4 (0x4), region = 83 }
 0x1b0   :  { %487 = vsyncpa [#allocation3], 1 }
 0x1b1   :  { %489 = vsyncpa [#allocation3 + $0x1], 1 }

</bundles_post_ra>
